<compile_context>
chip_gen: v5e
topology: v5e:2x2
jax: 0.10.0
libtpu: 0.0.40
codegen_flags: <defaults>
</compile_context>

<pallas_src>
import functools

import jax
import jax.numpy as jnp
from jax.experimental import pallas as pl
from jax.experimental.pallas import tpu as pltpu


def _round_up(x, m):
    return ((x + m - 1) // m) * m


def _conv1d_tap_kernel(w_ref, b_ref, xa_ref, xb_ref, o_ref, xwin_ref, *,
                       ksize, stride):
    """One output tile: o[c, p] = bias[c] + sum_k sum_ci W[k,c,ci] * x[ci, p*stride + k].

    w_ref    : (K, Cout, Cin)        bf16, resident across the grid
    b_ref    : (Cout, 1)             f32,  resident
    xa_ref   : (1, Cin, TL*stride)   bf16, input strip of this tile
    xb_ref   : (1, Cin, TL*stride)   bf16, next strip (supplies the K-stride halo)
    o_ref    : (1, Cout, TL)         f32,  lane-dense output tile
    xwin_ref : (Cin, 2*TL*stride)    bf16 scratch, halo'd window
    """
    tls = xa_ref.shape[-1]                      # TL * stride (static)
    cout, tl = o_ref.shape[1], o_ref.shape[2]

    # Stitch the halo'd window for this tile (both stores are lane-aligned).
    xwin_ref[:, :tls] = xa_ref[0]
    xwin_ref[:, tls:] = xb_ref[0]

    acc = jnp.zeros((cout, tl), jnp.float32)
    for k in range(ksize):                      # K is tiny & static -> unrolled
        if stride == 1:
            xk = xwin_ref[:, pl.ds(k, tl)]               # (Cin, TL) shifted view
        else:
            # TODO(synk): strided-lane reads (stride > 1) are not exercised by
            # the self-test below.
            xk = xwin_ref[:, pl.ds(k, tl, stride)]
        acc = acc + jnp.dot(w_ref[k], xk, preferred_element_type=jnp.float32)

    o_ref[0] = (acc + b_ref[...]).astype(o_ref.dtype)


def sequence_model_forward(x, weight, bias, *, stride, padding, tile_l=8192):
    """x: (B, L, Cin) f32; weight: (Cout, Cin, K) (PyTorch Conv1d layout); bias: (Cout,).

    Returns (B, Lout, Cout) f32, matching Sequence_Model.forward.
    """
    B, L, Cin = x.shape
    Cout, _, K = weight.shape
    Lout = (L + 2 * padding - K) // stride + 1
    assert Lout > 0

    # ---- tile size along Lout: multiple of 128, large enough to amortize the
    #      per-step grid overhead, small enough to give >= 4 grid steps when
    #      possible (megacore sharding on v7x).
    tl = min(_round_up(tile_l, 128), _round_up(Lout, 128))
    tiles_per_batch = max(1, -(-4 // B))                      # ceil(4 / B)
    tl = min(tl, max(128, _round_up(pl.cdiv(Lout, tiles_per_batch), 128)))
    n_l = pl.cdiv(Lout, tl)
    lout_pad = n_l * tl
    tls = tl * stride
    lin_pad = (n_l + 1) * tls          # one extra strip so the halo spec is never OOB
    assert lin_pad >= L + 2 * padding

    # ---- single fused layout pass: permute(0,2,1) + zero-pad + bf16 cast.
    x_t = jnp.transpose(x, (0, 2, 1)).astype(jnp.bfloat16)
    x_t = jnp.pad(x_t, ((0, 0), (0, 0), (padding, lin_pad - L - padding)))
    w_t = jnp.transpose(weight, (2, 0, 1)).astype(jnp.bfloat16)   # (K, Cout, Cin)
    b_t = bias.astype(jnp.float32).reshape(Cout, 1)

    kernel = functools.partial(_conv1d_tap_kernel, ksize=K, stride=stride)

    cost = pl.CostEstimate(
        flops=2 * B * lout_pad * Cout * Cin * K,
        transcendentals=0,
        bytes_accessed=(2 * x_t.size * 2            # input strips (main + halo), bf16
                        + w_t.size * 2 + b_t.size * 4
                        + B * Cout * lout_pad * 4),  # f32 output
    )

    out_t = pl.pallas_call(
        kernel,
        out_shape=jax.ShapeDtypeStruct((B, Cout, lout_pad), jnp.float32),
        grid=(B, n_l),
        in_specs=[
            pl.BlockSpec((K, Cout, Cin), lambda b, j: (0, 0, 0)),    # weight (resident)
            pl.BlockSpec((Cout, 1), lambda b, j: (0, 0)),            # bias   (resident)
            pl.BlockSpec((1, Cin, tls), lambda b, j: (b, 0, j)),     # input strip j
            pl.BlockSpec((1, Cin, tls), lambda b, j: (b, 0, j + 1)), # strip j+1 (halo)
        ],
        out_specs=pl.BlockSpec((1, Cout, tl), lambda b, j: (b, 0, j)),
        scratch_shapes=[pltpu.VMEM((Cin, 2 * tls), jnp.bfloat16)],
        compiler_params=pltpu.CompilerParams(
            dimension_semantics=("parallel", "parallel")),
        cost_estimate=cost,
    )(w_t, b_t, x_t, x_t)

    # (B, Cout, Lout_pad) -> (B, Lout, Cout): one fused slice+transpose pass.
    # Kept outside the kernel: with Cout=8, in-kernel (TL, 8) stores would be
    # masked 8-of-128-lane partials and cost more than this single pass.
    return jnp.transpose(out_t[:, :, :Lout], (0, 2, 1))


def reference_forward(x, weight, bias, *, stride, padding):
    """Pure-JAX f32 reference using lax.conv_general_dilated (NCW, OIW)."""
    x_ncw = jnp.transpose(x, (0, 2, 1))
    y = jax.lax.conv_general_dilated(
        x_ncw, weight, window_strides=(stride,), padding=[(padding, padding)],
        dimension_numbers=("NCH", "OIH", "NCH"))
    y = y + bias[None, :, None]
    return jnp.transpose(y, (0, 2, 1))


if __name__ == "__main__":
    in_channel, med_channel, out_channel = 4, 16, 8   # med_channel unused by the module
    kernel_size, stride, padding = 3, 1, 1

    key = jax.random.PRNGKey(0)
    kw, kb, kx1, kx2 = jax.random.split(key, 4)
    weight = 0.1 * jax.random.normal(
        kw, (out_channel, in_channel, kernel_size), dtype=jnp.float32)
    bias = 0.1 * jax.random.normal(kb, (out_channel,), dtype=jnp.float32)

    fwd = jax.jit(functools.partial(
        sequence_model_forward, stride=stride, padding=padding))
    ref = functools.partial(reference_forward, stride=stride, padding=padding)

    # Case 1: tiny (single tile per batch).  Case 2: multi-tile + ragged tail,
    # exercising the halo strip and the padded-output slice-off.
    for name, B, L, kx in (("tiny", 2, 16, kx1), ("multi-tile", 2, 300, kx2)):
        x = jax.random.normal(kx, (B, L, in_channel), dtype=jnp.float32)
        out = jax.block_until_ready(fwd(x, weight, bias))
        expect = ref(x, weight, bias)
        assert out.shape == expect.shape, (name, out.shape, expect.shape)
        err = float(jnp.max(jnp.abs(out - expect)))
        assert jnp.allclose(out, expect, atol=2e-2, rtol=2e-2), (name, err)

    print("KERNEL_OK")
</pallas_src>

<mosaic_0001>
module attributes {stable_mosaic.version = 11 : i64} {
  func.func @_conv1d_tap_kernel(%arg0: i32, %arg1: i32, %arg2: memref<3x8x4xbf16, #tpu.memory_space<vmem>>, %arg3: memref<8x1xf32, #tpu.memory_space<vmem>>, %arg4: memref<1x4x128xbf16, #tpu.memory_space<vmem>>, %arg5: memref<1x4x128xbf16, #tpu.memory_space<vmem>>, %arg6: memref<1x8x128xf32, #tpu.memory_space<vmem>>, %arg7: memref<4x256xbf16, #tpu.memory_space<vmem>>) attributes {dimension_semantics = [#tpu.dimension_semantics<parallel>, #tpu.dimension_semantics<parallel>], iteration_bounds = array<i64: 2, 1>, scalar_prefetch = 0 : i64, scratch_operands = 1 : i64, tpu.core_type = #tpu.core_type<tc>, window_params = [{pipeline_mode = #tpu.pipeline_mode<synchronous>, transform_indices = @transform_0, window_bounds = array<i64: 3, 8, 4>}, {pipeline_mode = #tpu.pipeline_mode<synchronous>, transform_indices = @transform_1, window_bounds = array<i64: 8, 1>}, {transform_indices = @transform_2, window_bounds = array<i64: 1, 4, 128>}, {transform_indices = @transform_3, window_bounds = array<i64: 1, 4, 128>}, {transform_indices = @transform_4, window_bounds = array<i64: 1, 8, 128>}]} {
    %c0 = arith.constant 0 : index
    %c0_0 = arith.constant 0 : index
    %c0_1 = arith.constant 0 : index
    %0 = vector.load %arg4[%c0, %c0_0, %c0_1] : memref<1x4x128xbf16, #tpu.memory_space<vmem>>, vector<1x4x128xbf16>
    %1 = vector.shape_cast %0 : vector<1x4x128xbf16> to vector<4x128xbf16>
    %c0_2 = arith.constant 0 : index
    %c0_3 = arith.constant 0 : index
    %2 = vector.load %arg7[%c0_2, %c0_3] : memref<4x256xbf16, #tpu.memory_space<vmem>>, vector<4x128xbf16>
    tpu.vector_store %arg7[%c0_2, %c0_3], %1 {strides = array<i32>} : memref<4x256xbf16, #tpu.memory_space<vmem>>, vector<4x128xbf16>,
    %c0_4 = arith.constant 0 : index
    %c0_5 = arith.constant 0 : index
    %c0_6 = arith.constant 0 : index
    %3 = vector.load %arg5[%c0_4, %c0_5, %c0_6] : memref<1x4x128xbf16, #tpu.memory_space<vmem>>, vector<1x4x128xbf16>
    %4 = vector.shape_cast %3 : vector<1x4x128xbf16> to vector<4x128xbf16>
    %c0_7 = arith.constant 0 : index
    %c128 = arith.constant 128 : index
    %5 = vector.load %arg7[%c0_7, %c128] : memref<4x256xbf16, #tpu.memory_space<vmem>>, vector<4x128xbf16>
    tpu.vector_store %arg7[%c0_7, %c128], %4 {strides = array<i32>} : memref<4x256xbf16, #tpu.memory_space<vmem>>, vector<4x128xbf16>,
    %cst = arith.constant 0.000000e+00 : f32
    %6 = vector.broadcast %cst : f32 to vector<8x128xf32>
    %c0_8 = arith.constant 0 : index
    %c0_9 = arith.constant 0 : index
    %7 = vector.load %arg7[%c0_8, %c0_9] : memref<4x256xbf16, #tpu.memory_space<vmem>>, vector<4x128xbf16>
    %c0_10 = arith.constant 0 : index
    %c0_11 = arith.constant 0 : index
    %c0_12 = arith.constant 0 : index
    %8 = vector.load %arg2[%c0_10, %c0_11, %c0_12] : memref<3x8x4xbf16, #tpu.memory_space<vmem>>, vector<1x8x4xbf16>
    %9 = vector.shape_cast %8 : vector<1x8x4xbf16> to vector<8x4xbf16>
    %cst_13 = arith.constant dense<0.000000e+00> : vector<8x128xf32>
    %10 = tpu.matmul %9, %7, %cst_13 {dimension_numbers = #tpu.dot_dimension_numbers<[1], [0], [0], [1], [0, 0, 1, 1], [], []>} : vector<8x4xbf16>, vector<4x128xbf16>, vector<8x128xf32> -> vector<8x128xf32>
    %11 = arith.addf %6, %10 : vector<8x128xf32>
    %c0_14 = arith.constant 0 : index
    %c1 = arith.constant 1 : index
    %12 = vector.load %arg7[%c0_14, %c1] : memref<4x256xbf16, #tpu.memory_space<vmem>>, vector<4x128xbf16>
    %c1_15 = arith.constant 1 : index
    %c0_16 = arith.constant 0 : index
    %c0_17 = arith.constant 0 : index
    %13 = vector.load %arg2[%c1_15, %c0_16, %c0_17] : memref<3x8x4xbf16, #tpu.memory_space<vmem>>, vector<1x8x4xbf16>
    %14 = vector.shape_cast %13 : vector<1x8x4xbf16> to vector<8x4xbf16>
    %cst_18 = arith.constant dense<0.000000e+00> : vector<8x128xf32>
    %15 = tpu.matmul %14, %12, %cst_18 {dimension_numbers = #tpu.dot_dimension_numbers<[1], [0], [0], [1], [0, 0, 1, 1], [], []>} : vector<8x4xbf16>, vector<4x128xbf16>, vector<8x128xf32> -> vector<8x128xf32>
    %16 = arith.addf %11, %15 : vector<8x128xf32>
    %c0_19 = arith.constant 0 : index
    %c2 = arith.constant 2 : index
    %17 = vector.load %arg7[%c0_19, %c2] : memref<4x256xbf16, #tpu.memory_space<vmem>>, vector<4x128xbf16>
    %c2_20 = arith.constant 2 : index
    %c0_21 = arith.constant 0 : index
    %c0_22 = arith.constant 0 : index
    %18 = vector.load %arg2[%c2_20, %c0_21, %c0_22] : memref<3x8x4xbf16, #tpu.memory_space<vmem>>, vector<1x8x4xbf16>
    %19 = vector.shape_cast %18 : vector<1x8x4xbf16> to vector<8x4xbf16>
    %cst_23 = arith.constant dense<0.000000e+00> : vector<8x128xf32>
    %20 = tpu.matmul %19, %17, %cst_23 {dimension_numbers = #tpu.dot_dimension_numbers<[1], [0], [0], [1], [0, 0, 1, 1], [], []>} : vector<8x4xbf16>, vector<4x128xbf16>, vector<8x128xf32> -> vector<8x128xf32>
    %21 = arith.addf %16, %20 : vector<8x128xf32>
    %c0_24 = arith.constant 0 : index
    %c0_25 = arith.constant 0 : index
    %22 = vector.load %arg3[%c0_24, %c0_25] : memref<8x1xf32, #tpu.memory_space<vmem>>, vector<8x1xf32>
    %23 = vector.broadcast %22 : vector<8x1xf32> to vector<8x128xf32>
    %24 = arith.addf %21, %23 : vector<8x128xf32>
    %c0_26 = arith.constant 0 : index
    %c0_27 = arith.constant 0 : index
    %c0_28 = arith.constant 0 : index
    %25 = vector.load %arg6[%c0_26, %c0_27, %c0_28] : memref<1x8x128xf32, #tpu.memory_space<vmem>>, vector<1x8x128xf32>
    %26 = vector.shape_cast %25 : vector<1x8x128xf32> to vector<8x128xf32>
    %27 = vector.shape_cast %24 : vector<8x128xf32> to vector<1x8x128xf32>
    tpu.vector_store %arg6[%c0_26, %c0_27, %c0_28], %27 {strides = array<i32>} : memref<1x8x128xf32, #tpu.memory_space<vmem>>, vector<1x8x128xf32>,
    return
  }
  func.func @transform_0(%arg0: i32, %arg1: i32) -> (i32, i32, i32) {
    %c0_i32 = arith.constant 0 : i32
    %c0_i32_0 = arith.constant 0 : i32
    %c0_i32_1 = arith.constant 0 : i32
    %c0_i32_2 = arith.constant 0 : i32
    return %c0_i32, %c0_i32_0, %c0_i32_1 : i32, i32, i32
  }
  func.func @transform_1(%arg0: i32, %arg1: i32) -> (i32, i32) {
    %c0_i32 = arith.constant 0 : i32
    %c0_i32_0 = arith.constant 0 : i32
    %c0_i32_1 = arith.constant 0 : i32
    return %c0_i32, %c0_i32_0 : i32, i32
  }
  func.func @transform_2(%arg0: i32, %arg1: i32) -> (i32, i32, i32) {
    %c0_i32 = arith.constant 0 : i32
    %c0_i32_0 = arith.constant 0 : i32
    return %arg0, %c0_i32, %arg1 : i32, i32, i32
  }
  func.func @transform_3(%arg0: i32, %arg1: i32) -> (i32, i32, i32) {
    %c1_i32 = arith.constant 1 : i32
    %0 = arith.addi %arg1, %c1_i32 : i32
    %c0_i32 = arith.constant 0 : i32
    %c0_i32_0 = arith.constant 0 : i32
    return %arg0, %c0_i32, %0 : i32, i32, i32
  }
  func.func @transform_4(%arg0: i32, %arg1: i32) -> (i32, i32, i32) {
    %c0_i32 = arith.constant 0 : i32
    %c0_i32_0 = arith.constant 0 : i32
    return %arg0, %c0_i32, %arg1 : i32, i32, i32
  }
}

</mosaic_0001>

<bundles_post_ra>
// kernel: sequence_model_forward.1
= control target key start
LH: loop header
LB: loop body
LE: loop exit
PB: predicated region body
PF: predicated region fallthrough
CT: control target
= control target key end

     0   :  { %s567_s15 = smov 0   ;;  %s569_s16 = smov 0   ;;  %s625_s0 = inlined_call_operand.vmem [shape: bf16[3,8,4], index: 0, kind: input, shape index: {}]   ;;  %s626_s1 = inlined_call_operand.vmem [shape: f32[8,1], index: 1, kind: input, shape index: {}]   ;;  %s627_s2 = inlined_call_operand.vmem [shape: bf16[2,4,256], index: 2, kind: input, shape index: {}, may-alias: {2,3}]   ;;  %s628_s3 = inlined_call_operand.vmem [shape: bf16[2,4,256], index: 3, kind: input, shape index: {}, may-alias: {2,3}]   ;;  %s629_s4 = inlined_call_operand.vmem [shape: f32[2,8,128], index: 4, kind: output, shape index: {}]  }
   0x1   :  { %s571_s17 = smov 0  }
   0x2 LB: > { %s26_s18 = sadd.s32 1, %s533_s16  ;;  %p469_p0 = scmp.ge.s32.totalorder %s537_s17, 1  ;;  %s537_s17 = sphi %s571_s17, %s14_s17   ;;  %s533_s16 = sphi %s569_s16, %s631_s16   ;;  %s529_s15 = sphi %s567_s15, %s630_s15  }
   0x3   : > { %p28_p1 = scmp.ge.s32.totalorder %s26_s18, 2  ;;  %p200_p2 = scmp.lt.s32.totalorder %s537_s17, 3 }
   0x5   : > { %s633_s18 = smov (%p28_p1, %s26_s18), 0  ;;  %p201_p3 = pnand %p469_p0, %p200_p2 }
   0x6   : > { %p240_p4 = scmp.lt.s32.totalorder (!%p201_p3), %s529_s15, 1  ;;  %s539_s27 = smov (!%p201_p3), 127  }
   0x7   : > { %204 = sbr.rel (%p201_p3) target bundleno = 309 (0x135), region = 36  ;;  %s540_s28 = smov (!%p201_p3), 126  }
   0xc   : > { %s635_s15 = smov (!%p240_p4, %s529_s15), 1  ;;  %vm291_vm0 = vcmask 1041408   ;;  %vm287_vm1 = vcmask 31744   ;;  %v271_v10 = vld [vmem:[%s625_s0] sm:$0xf]  ;;  %v541_v12 = vmov 0  }
   0xd   : > { %s482_s19 = sshll.u32 %s635_s15, 2  ;;  %v362_v11 = vld [vmem:[%s626_s1] sm:$0xff]  ;;  %513 = vset.pattern.permute.xlu2 %v541_v12  ;;  %514 = vset.pattern.permute.xlu0 %v541_v12  ;;  %vm285_vm2 = vcmask 1039360   ;;  %vm340_vm3 = vcmask 1031168   ;;  %v478_v22 = vld [vmem:[%s625_s0 + $0x8] sm:$0xf] }
   0xe   : > { %s247_s22 = scalar_lea.vmem %s627_s2, %s482_s19  ;;  %s484_s23 = sadd.s32 2, %s482_s19  ;;  %365 = vperm.xlu2 %513, %v362_v11   ;;  %v475_v18 = vld [vmem:[%s625_s0 + $0x4] sm:$0xf] }
   0xf   : > { %s256_s26 = scalar_lea.vmem %s628_s3, %s484_s23  ;;  %v266_v0 = vld [vmem:[%s247_s22] sm:$0x3]  ;;  %s474_s11 = sshll.u32 %s635_s15, 3 }
  0x10   : > { %267 = vst [vmem:[#allocation2] sm:$0x3] %v266_v0  ;;  %v268_v1 = vld [vmem:[%s256_s26] sm:$0x3]  ;;  %s264_s14 = scalar_lea.vmem %s629_s4, %s474_s11 }
  0x11   : > { %269 = vst [vmem:[#allocation2 + $0x2] sm:$0x3] %v268_v1 }
  0x17   : > { %v270_v8 = vld [vmem:[#allocation2] sm:$0x3] }
  0x18   : > { %v272_v2 = vld [vmem:[#allocation2] sm:$0xf]  ;;  %v312_v9 = vsel %vm291_vm0, %v270_v8, 0 }
  0x19   : > { %276 = vst [vmem:[#allocation1] ss:$4 sm:$0xff] %v272_v2  ;;  %v327_v3 = vld [vmem:[#allocation2] sm:$0xf]  ;;  %321 = vmatpush.bf16.msra.mxu1 %v312_v9 }
  0x1c   : > { %477 = vmatmul.msk.bf16.vlgmr.msra.gmra.mxu1 %vm287_vm1, %v271_v10 }
  0x20   : > { %v277_v4 = vld.sshfl [vmem:[#allocation1] sm:$0xff pattern:$0x73625140]  ;;  %v279_v5 = vld.sshfl [vmem:[#allocation1 + $0x8] sm:$0xff pattern:$0x73625140] }
  0x21   : > { %281 = vrot.lane.b32.xlu1 %v277_v4, %s539_s27  ;;  %331 = vst [vmem:[#allocation1] ss:$4 sm:$0xff] %v327_v3 }
  0x28   : > { %v332_v6 = vld.sshfl [vmem:[#allocation1] sm:$0xff pattern:$0x73625140]  ;;  %v334_v7 = vld.sshfl [vmem:[#allocation1 + $0x8] sm:$0xff pattern:$0x73625140] }
  0x29   : > { %336 = vrot.lane.b32.xlu0 %v332_v6, %s540_s28  ;;  %283 = vrot.lane.b32.xlu1 %v279_v5, %s539_s27 }
  0x31   : > { %338 = vrot.lane.b32.xlu0 %v334_v7, %s540_s28 }
  0x68   : > { %v366_v29 = vpop.permute.xlu2 %365 }
  0x93   : > { %v282_v13 = vpop.permute.xlu1 %281 }
  0x99   : > { %v323_v23 = vpop.f32.mrf.mxu1 }
  0x9b   : > { %v337_v14 = vpop.permute.xlu0 %336  ;;  %v284_v15 = vpop.permute.xlu1 %283 }
  0x9c   : > { %v286_v16 = vsel %vm285_vm2, %v282_v13, %v284_v15 }
  0x9d   : > { %v293_v17 = vsel %vm291_vm0, %v286_v16, 0 }
  0x9e   : > { %302 = vmatpush.bf16.msra.mxu0 %v293_v17 }
  0xa1   : > { %476 = vmatmul.msk.bf16.vlgmr.msra.gmra.mxu0 %vm287_vm1, %v475_v18  ;;  %v325_v24 = vpop.f32.mrf.mxu1 }
  0xa3   : > { %v339_v19 = vpop.permute.xlu0 %338 }
  0xa4   : > { %v341_v20 = vsel %vm340_vm3, %v337_v14, %v339_v19 }
  0xa5   : > { %v346_v21 = vsel %vm291_vm0, %v341_v20, 0 }
  0xa6   : > { %355 = vmatpush.bf16.msra.mxu2 %v346_v21 }
  0xa9   : > { %479 = vmatmul.msk.bf16.vlgmr.msra.gmra.mxu2 %vm287_vm1, %v478_v22 }
 0x11e   : > { %v304_v25 = vpop.f32.mrf.mxu0 }
 0x11f   : > { %v324_v27 = vadd.f32 %v323_v23, %v304_v25 }
 0x126   : > { %v306_v26 = vpop.f32.mrf.mxu0 }
 0x12c   : > { %v357_v28 = vpop.f32.mrf.mxu2 }
 0x12d   : > { %v361_v30 = vadd.f32 %v357_v28, %v324_v27 }
 0x12f   : > { %v368_v31 = vadd.f32 %v366_v29, %v361_v30 }
 0x131   : > { %369 = vst [vmem:[%s264_s14] sm:$0xff] %v368_v31 }
 0x134   : > { %v359_v32 = vpop.f32.mrf.mxu2 }
 0x135 PF: > { %s14_s17 = sadd.s32 1, %s537_s17   ;;  %s630_s15 = smov %s533_s16 }
 0x136   : > { %p11_p5 = scmp.ge.s32.totalorder %s14_s17, 4   ;;  %s631_s16 = smov %s633_s18 }
 0x138   :  { %13 = sbr.rel (!%p11_p5) target bundleno = 2 (0x2), region = 71 }

</bundles_post_ra>
